<compile_context>
chip_gen: v5e
topology: v5e:2x2
jax: 0.10.0
libtpu: 0.0.40
codegen_flags: <defaults>
</compile_context>

<pallas_src>
import functools

import jax
import jax.numpy as jnp
from jax.experimental import pallas as pl
from jax.experimental.pallas import tpu as pltpu


# ----------------------------- kernel ---------------------------------------


def _critic_kernel(state_ref, action_ref,
                   w1s_ref, w1a_ref, b14_ref,
                   w2_ref, b2_ref, w5_ref, b5_ref,
                   w3_ref, w6_ref, b36_ref,
                   out_ref):
    H = w2_ref.shape[0]
    wdt = w1s_ref.dtype

    s = state_ref[...].astype(wdt)
    a = action_ref[...].astype(wdt)

    # Fused layer 1 for both heads (one [in_dim, 2H] weight, split by rows so
    # no concat of (state, action) is ever materialized).
    y1 = (jnp.dot(s, w1s_ref[...], preferred_element_type=jnp.float32)
          + jnp.dot(a, w1a_ref[...], preferred_element_type=jnp.float32)
          + b14_ref[...])
    y1 = jnp.maximum(y1, 0.0)                       # f32 elementwise (v5e)

    h = y1[:, :H].astype(wdt)                       # Q1 hidden
    g = y1[:, H:].astype(wdt)                       # Q2 hidden

    h2 = jnp.maximum(
        jnp.dot(h, w2_ref[...], preferred_element_type=jnp.float32)
        + b2_ref[...], 0.0)
    g2 = jnp.maximum(
        jnp.dot(g, w5_ref[...], preferred_element_type=jnp.float32)
        + b5_ref[...], 0.0)

    # Final 256 -> 1 layers as lane reductions instead of N=1 MXU matmuls.
    q1 = jnp.sum(h2 * w3_ref[...], axis=-1, keepdims=True)   # [TB, 1]
    q2 = jnp.sum(g2 * w6_ref[...], axis=-1, keepdims=True)   # [TB, 1]

    out_ref[...] = (jnp.concatenate([q1, q2], axis=1)
                    + b36_ref[...]).astype(out_ref.dtype)    # [TB, 2]


# ----------------------------- wrapper ---------------------------------------


def _round_up(x, m):
    return ((x + m - 1) // m) * m


def _resident(shape):
    # Weight block: same block index on every grid step -> stays in VMEM.
    return pl.BlockSpec(shape, lambda *_: (0,) * len(shape))


@functools.partial(jax.jit, static_argnames=("block_batch",))
def critic_forward(state, action, params, *, block_batch=512):
    """Returns (q1, q2), each [B, 1] f32, matching the PyTorch Critic.forward."""
    B, sd = state.shape
    ad = action.shape[1]
    H = params["w2"].shape[0]

    # Batch tile: multiple of 8 sublanes, capped (budgeted for v7x's 64 MiB VMEM,
    # far under the 32 MiB scoped default at this tile size).
    tb = min(block_batch, _round_up(B, 8))
    b_pad = _round_up(B, tb)
    if b_pad != B:
        pad = b_pad - B
        state = jnp.pad(state, ((0, pad), (0, 0)))
        action = jnp.pad(action, ((0, pad), (0, 0)))

    grid = (b_pad // tb,)

    flops = 2 * b_pad * ((sd + ad) * 2 * H + 2 * H * H + 2 * H)
    bytes_accessed = (b_pad * (sd + ad + 2) * 4
                      + sum(int(v.size) * v.dtype.itemsize
                            for v in params.values()))

    out = pl.pallas_call(
        _critic_kernel,
        out_shape=jax.ShapeDtypeStruct((b_pad, 2), jnp.float32),
        grid=grid,
        in_specs=[
            pl.BlockSpec((tb, sd), lambda i: (i, 0)),   # state tile
            pl.BlockSpec((tb, ad), lambda i: (i, 0)),   # action tile
            _resident(params["w1s"].shape),
            _resident(params["w1a"].shape),
            _resident(params["b14"].shape),
            _resident(params["w2"].shape),
            _resident(params["b2"].shape),
            _resident(params["w5"].shape),
            _resident(params["b5"].shape),
            _resident(params["w3"].shape),
            _resident(params["w6"].shape),
            _resident(params["b36"].shape),
        ],
        out_specs=pl.BlockSpec((tb, 2), lambda i: (i, 0)),
        compiler_params=pltpu.CompilerParams(
            dimension_semantics=("parallel",)),
        cost_estimate=pl.CostEstimate(
            flops=flops, transcendentals=0, bytes_accessed=bytes_accessed),
    )(state, action,
      params["w1s"], params["w1a"], params["b14"],
      params["w2"], params["b2"], params["w5"], params["b5"],
      params["w3"], params["w6"], params["b36"])

    return out[:B, 0:1], out[:B, 1:2]


# ------------------------- params (init + packing) ---------------------------


def init_critic_params(key, state_dim, action_dim, hidden=256):
    """f32 params mirroring nn.Linear defaults; weights as [in, out], biases [1, out]."""
    in_dim = state_dim + action_dim
    dims = [(in_dim, hidden), (hidden, hidden), (hidden, 1),    # Q1: l1,l2,l3
            (in_dim, hidden), (hidden, hidden), (hidden, 1)]    # Q2: l4,l5,l6
    raw = []
    keys = jax.random.split(key, 2 * len(dims))
    for i, (fan_in, fan_out) in enumerate(dims):
        bound = 1.0 / float(fan_in) ** 0.5
        w = jax.random.uniform(keys[2 * i], (fan_in, fan_out),
                               minval=-bound, maxval=bound, dtype=jnp.float32)
        b = jax.random.uniform(keys[2 * i + 1], (1, fan_out),
                               minval=-bound, maxval=bound, dtype=jnp.float32)
        raw += [w, b]
    return tuple(raw)


def pack_critic_params(raw, state_dim, weight_dtype=jnp.bfloat16):
    """Kernel layout: fused layer-1 weight split by state/action rows, bf16 MXU
    weights, f32 biases and f32 rows for the final lane-reduction layers."""
    (w1, b1, w2, b2, w3, b3, w4, b4, w5, b5, w6, b6) = raw
    w14 = jnp.concatenate([w1, w4], axis=1)                 # [in_dim, 2H]
    return {
        "w1s": w14[:state_dim].astype(weight_dtype),        # [sd, 2H]
        "w1a": w14[state_dim:].astype(weight_dtype),        # [ad, 2H]
        "b14": jnp.concatenate([b1, b4], axis=1),           # [1, 2H]  f32
        "w2": w2.astype(weight_dtype),                      # [H, H]
        "b2": b2,                                           # [1, H]   f32
        "w5": w5.astype(weight_dtype),                      # [H, H]
        "b5": b5,                                           # [1, H]   f32
        "w3": w3.T,                                         # [1, H]   f32
        "w6": w6.T,                                         # [1, H]   f32
        "b36": jnp.concatenate([b3, b6], axis=1),           # [1, 2]   f32
    }


# ----------------------------- references ------------------------------------


def _reference_packed(state, action, p):
    """Plain-JAX mirror of the kernel math (bf16 operands, f32 accumulation)."""
    wdt = p["w2"].dtype
    H = p["w2"].shape[0]
    s = state.astype(wdt)
    a = action.astype(wdt)
    y1 = (jnp.dot(s, p["w1s"], preferred_element_type=jnp.float32)
          + jnp.dot(a, p["w1a"], preferred_element_type=jnp.float32)
          + p["b14"])
    y1 = jnp.maximum(y1, 0.0)
    h = y1[:, :H].astype(wdt)
    g = y1[:, H:].astype(wdt)
    h2 = jnp.maximum(jnp.dot(h, p["w2"], preferred_element_type=jnp.float32)
                     + p["b2"], 0.0)
    g2 = jnp.maximum(jnp.dot(g, p["w5"], preferred_element_type=jnp.float32)
                     + p["b5"], 0.0)
    q1 = jnp.sum(h2 * p["w3"], axis=-1, keepdims=True) + p["b36"][:, 0:1]
    q2 = jnp.sum(g2 * p["w6"], axis=-1, keepdims=True) + p["b36"][:, 1:2]
    return q1, q2


def _reference_f32(state, action, raw):
    """Exact f32 PyTorch-equivalent forward."""
    (w1, b1, w2, b2, w3, b3, w4, b4, w5, b5, w6, b6) = raw
    sa = jnp.concatenate([state, action], axis=1)
    q1 = jnp.maximum(sa @ w1 + b1, 0.0)
    q1 = jnp.maximum(q1 @ w2 + b2, 0.0)
    q1 = q1 @ w3 + b3
    q2 = jnp.maximum(sa @ w4 + b4, 0.0)
    q2 = jnp.maximum(q2 @ w5 + b5, 0.0)
    q2 = q2 @ w6 + b6
    return q1, q2


# ------------------------------- demo -----------------------------------------


if __name__ == "__main__":
    key = jax.random.PRNGKey(0)
    k_state, k_action, k_params = jax.random.split(key, 3)

    batch, state_dim, action_dim = 8, 24, 8
    state = jax.random.normal(k_state, (batch, state_dim), dtype=jnp.float32)
    action = jax.random.normal(k_action, (batch, action_dim), dtype=jnp.float32)

    raw = init_critic_params(k_params, state_dim, action_dim)
    params = pack_critic_params(raw, state_dim)

    q1, q2 = critic_forward(state, action, params)
    jax.block_until_ready((q1, q2))
    assert q1.shape == (batch, 1) and q2.shape == (batch, 1)

    # Tight check against a plain-JAX mirror of the kernel math.
    r1, r2 = _reference_packed(state, action, params)
    assert jnp.allclose(q1, r1, atol=2e-3, rtol=2e-3)
    assert jnp.allclose(q2, r2, atol=2e-3, rtol=2e-3)

    # Loose check against the exact f32 PyTorch-equivalent forward
    # (difference is only bf16 weight/activation rounding).
    f1, f2 = _reference_f32(state, action, raw)
    assert jnp.allclose(q1, f1, atol=5e-2, rtol=5e-2)
    assert jnp.allclose(q2, f2, atol=5e-2, rtol=5e-2)

    print("KERNEL_OK")
</pallas_src>

<mosaic_0001>
module attributes {stable_mosaic.version = 11 : i64} {
  func.func @_critic_kernel(%arg0: i32, %arg1: memref<8x24xf32, #tpu.memory_space<vmem>>, %arg2: memref<8x8xf32, #tpu.memory_space<vmem>>, %arg3: memref<24x512xbf16, #tpu.memory_space<vmem>>, %arg4: memref<8x512xbf16, #tpu.memory_space<vmem>>, %arg5: memref<1x512xf32, #tpu.memory_space<vmem>>, %arg6: memref<256x256xbf16, #tpu.memory_space<vmem>>, %arg7: memref<1x256xf32, #tpu.memory_space<vmem>>, %arg8: memref<256x256xbf16, #tpu.memory_space<vmem>>, %arg9: memref<1x256xf32, #tpu.memory_space<vmem>>, %arg10: memref<1x256xf32, #tpu.memory_space<vmem>>, %arg11: memref<1x256xf32, #tpu.memory_space<vmem>>, %arg12: memref<1x2xf32, #tpu.memory_space<vmem>>, %arg13: memref<8x2xf32, #tpu.memory_space<vmem>>) attributes {dimension_semantics = [#tpu.dimension_semantics<parallel>], iteration_bounds = array<i64: 1>, scalar_prefetch = 0 : i64, scratch_operands = 0 : i64, tpu.core_type = #tpu.core_type<tc>, window_params = [{transform_indices = @transform_0, window_bounds = array<i64: 8, 24>}, {transform_indices = @transform_1, window_bounds = array<i64: 8, 8>}, {pipeline_mode = #tpu.pipeline_mode<synchronous>, transform_indices = @transform_2, window_bounds = array<i64: 24, 512>}, {pipeline_mode = #tpu.pipeline_mode<synchronous>, transform_indices = @transform_3, window_bounds = array<i64: 8, 512>}, {pipeline_mode = #tpu.pipeline_mode<synchronous>, transform_indices = @transform_4, window_bounds = array<i64: 1, 512>}, {pipeline_mode = #tpu.pipeline_mode<synchronous>, transform_indices = @transform_5, window_bounds = array<i64: 256, 256>}, {pipeline_mode = #tpu.pipeline_mode<synchronous>, transform_indices = @transform_6, window_bounds = array<i64: 1, 256>}, {pipeline_mode = #tpu.pipeline_mode<synchronous>, transform_indices = @transform_7, window_bounds = array<i64: 256, 256>}, {pipeline_mode = #tpu.pipeline_mode<synchronous>, transform_indices = @transform_8, window_bounds = array<i64: 1, 256>}, {pipeline_mode = #tpu.pipeline_mode<synchronous>, transform_indices = @transform_9, window_bounds = array<i64: 1, 256>}, {pipeline_mode = #tpu.pipeline_mode<synchronous>, transform_indices = @transform_10, window_bounds = array<i64: 1, 256>}, {pipeline_mode = #tpu.pipeline_mode<synchronous>, transform_indices = @transform_11, window_bounds = array<i64: 1, 2>}, {transform_indices = @transform_12, window_bounds = array<i64: 8, 2>}]} {
    %c0 = arith.constant 0 : index
    %c0_0 = arith.constant 0 : index
    %0 = vector.load %arg1[%c0, %c0_0] : memref<8x24xf32, #tpu.memory_space<vmem>>, vector<8x24xf32>
    %1 = arith.truncf %0 : vector<8x24xf32> to vector<8x24xbf16>
    %c0_1 = arith.constant 0 : index
    %c0_2 = arith.constant 0 : index
    %2 = vector.load %arg2[%c0_1, %c0_2] : memref<8x8xf32, #tpu.memory_space<vmem>>, vector<8x8xf32>
    %3 = arith.truncf %2 : vector<8x8xf32> to vector<8x8xbf16>
    %c0_3 = arith.constant 0 : index
    %c0_4 = arith.constant 0 : index
    %4 = vector.load %arg3[%c0_3, %c0_4] : memref<24x512xbf16, #tpu.memory_space<vmem>>, vector<24x512xbf16>
    %cst = arith.constant dense<0.000000e+00> : vector<8x512xf32>
    %5 = tpu.matmul %1, %4, %cst {dimension_numbers = #tpu.dot_dimension_numbers<[1], [0], [0], [1], [0, 0, 1, 1], [], []>} : vector<8x24xbf16>, vector<24x512xbf16>, vector<8x512xf32> -> vector<8x512xf32>
    %c0_5 = arith.constant 0 : index
    %c0_6 = arith.constant 0 : index
    %6 = vector.load %arg4[%c0_5, %c0_6] : memref<8x512xbf16, #tpu.memory_space<vmem>>, vector<8x512xbf16>
    %cst_7 = arith.constant dense<0.000000e+00> : vector<8x512xf32>
    %7 = tpu.matmul %3, %6, %cst_7 {dimension_numbers = #tpu.dot_dimension_numbers<[1], [0], [0], [1], [0, 0, 1, 1], [], []>} : vector<8x8xbf16>, vector<8x512xbf16>, vector<8x512xf32> -> vector<8x512xf32>
    %8 = arith.addf %5, %7 : vector<8x512xf32>
    %c0_8 = arith.constant 0 : index
    %c0_9 = arith.constant 0 : index
    %9 = vector.load %arg5[%c0_8, %c0_9] : memref<1x512xf32, #tpu.memory_space<vmem>>, vector<1x512xf32>
    %10 = vector.broadcast %9 : vector<1x512xf32> to vector<8x512xf32>
    %11 = arith.addf %8, %10 : vector<8x512xf32>
    %cst_10 = arith.constant 0.000000e+00 : f32
    %12 = vector.broadcast %cst_10 : f32 to vector<8x512xf32>
    %13 = arith.maximumf %11, %12 : vector<8x512xf32>
    %14 = vector.extract_strided_slice %13 {offsets = [0, 0], sizes = [8, 256], strides = [1, 1]} : vector<8x512xf32> to vector<8x256xf32>
    %15 = arith.truncf %14 : vector<8x256xf32> to vector<8x256xbf16>
    %16 = vector.extract_strided_slice %13 {offsets = [0, 256], sizes = [8, 256], strides = [1, 1]} : vector<8x512xf32> to vector<8x256xf32>
    %17 = arith.truncf %16 : vector<8x256xf32> to vector<8x256xbf16>
    %c0_11 = arith.constant 0 : index
    %c0_12 = arith.constant 0 : index
    %18 = vector.load %arg6[%c0_11, %c0_12] : memref<256x256xbf16, #tpu.memory_space<vmem>>, vector<256x256xbf16>
    %cst_13 = arith.constant dense<0.000000e+00> : vector<8x256xf32>
    %19 = tpu.matmul %15, %18, %cst_13 {dimension_numbers = #tpu.dot_dimension_numbers<[1], [0], [0], [1], [0, 0, 1, 1], [], []>} : vector<8x256xbf16>, vector<256x256xbf16>, vector<8x256xf32> -> vector<8x256xf32>
    %c0_14 = arith.constant 0 : index
    %c0_15 = arith.constant 0 : index
    %20 = vector.load %arg7[%c0_14, %c0_15] : memref<1x256xf32, #tpu.memory_space<vmem>>, vector<1x256xf32>
    %21 = vector.broadcast %20 : vector<1x256xf32> to vector<8x256xf32>
    %22 = arith.addf %19, %21 : vector<8x256xf32>
    %cst_16 = arith.constant 0.000000e+00 : f32
    %23 = vector.broadcast %cst_16 : f32 to vector<8x256xf32>
    %24 = arith.maximumf %22, %23 : vector<8x256xf32>
    %c0_17 = arith.constant 0 : index
    %c0_18 = arith.constant 0 : index
    %25 = vector.load %arg8[%c0_17, %c0_18] : memref<256x256xbf16, #tpu.memory_space<vmem>>, vector<256x256xbf16>
    %cst_19 = arith.constant dense<0.000000e+00> : vector<8x256xf32>
    %26 = tpu.matmul %17, %25, %cst_19 {dimension_numbers = #tpu.dot_dimension_numbers<[1], [0], [0], [1], [0, 0, 1, 1], [], []>} : vector<8x256xbf16>, vector<256x256xbf16>, vector<8x256xf32> -> vector<8x256xf32>
    %c0_20 = arith.constant 0 : index
    %c0_21 = arith.constant 0 : index
    %27 = vector.load %arg9[%c0_20, %c0_21] : memref<1x256xf32, #tpu.memory_space<vmem>>, vector<1x256xf32>
    %28 = vector.broadcast %27 : vector<1x256xf32> to vector<8x256xf32>
    %29 = arith.addf %26, %28 : vector<8x256xf32>
    %cst_22 = arith.constant 0.000000e+00 : f32
    %30 = vector.broadcast %cst_22 : f32 to vector<8x256xf32>
    %31 = arith.maximumf %29, %30 : vector<8x256xf32>
    %c0_23 = arith.constant 0 : index
    %c0_24 = arith.constant 0 : index
    %32 = vector.load %arg10[%c0_23, %c0_24] : memref<1x256xf32, #tpu.memory_space<vmem>>, vector<1x256xf32>
    %33 = vector.broadcast %32 : vector<1x256xf32> to vector<8x256xf32>
    %34 = arith.mulf %24, %33 : vector<8x256xf32>
    %cst_25 = arith.constant dense<0.000000e+00> : vector<8xf32>
    %35 = vector.multi_reduction <add>, %34, %cst_25 [1] : vector<8x256xf32> to vector<8xf32>
    %36 = vector.shape_cast %35 : vector<8xf32> to vector<8x1xf32>
    %c0_26 = arith.constant 0 : index
    %c0_27 = arith.constant 0 : index
    %37 = vector.load %arg11[%c0_26, %c0_27] : memref<1x256xf32, #tpu.memory_space<vmem>>, vector<1x256xf32>
    %38 = vector.broadcast %37 : vector<1x256xf32> to vector<8x256xf32>
    %39 = arith.mulf %31, %38 : vector<8x256xf32>
    %cst_28 = arith.constant dense<0.000000e+00> : vector<8xf32>
    %40 = vector.multi_reduction <add>, %39, %cst_28 [1] : vector<8x256xf32> to vector<8xf32>
    %41 = vector.shape_cast %40 : vector<8xf32> to vector<8x1xf32>
    %42 = tpu.concatenate %36, %41 in 1 : vector<8x1xf32>, vector<8x1xf32> -> vector<8x2xf32>
    %c0_29 = arith.constant 0 : index
    %c0_30 = arith.constant 0 : index
    %43 = vector.load %arg12[%c0_29, %c0_30] : memref<1x2xf32, #tpu.memory_space<vmem>>, vector<1x2xf32>
    %44 = vector.broadcast %43 : vector<1x2xf32> to vector<8x2xf32>
    %45 = arith.addf %42, %44 : vector<8x2xf32>
    %c0_31 = arith.constant 0 : index
    %c0_32 = arith.constant 0 : index
    %46 = vector.load %arg13[%c0_31, %c0_32] : memref<8x2xf32, #tpu.memory_space<vmem>>, vector<8x2xf32>
    tpu.vector_store %arg13[%c0_31, %c0_32], %45 {strides = array<i32>} : memref<8x2xf32, #tpu.memory_space<vmem>>, vector<8x2xf32>,
    return
  }
  func.func @transform_0(%arg0: i32) -> (i32, i32) {
    %c0_i32 = arith.constant 0 : i32
    %c0_i32_0 = arith.constant 0 : i32
    return %arg0, %c0_i32 : i32, i32
  }
  func.func @transform_1(%arg0: i32) -> (i32, i32) {
    %c0_i32 = arith.constant 0 : i32
    %c0_i32_0 = arith.constant 0 : i32
    return %arg0, %c0_i32 : i32, i32
  }
  func.func @transform_2(%arg0: i32) -> (i32, i32) {
    %c0_i32 = arith.constant 0 : i32
    %c0_i32_0 = arith.constant 0 : i32
    %c0_i32_1 = arith.constant 0 : i32
    return %c0_i32, %c0_i32_0 : i32, i32
  }
  func.func @transform_3(%arg0: i32) -> (i32, i32) {
    %c0_i32 = arith.constant 0 : i32
    %c0_i32_0 = arith.constant 0 : i32
    %c0_i32_1 = arith.constant 0 : i32
    return %c0_i32, %c0_i32_0 : i32, i32
  }
  func.func @transform_4(%arg0: i32) -> (i32, i32) {
    %c0_i32 = arith.constant 0 : i32
    %c0_i32_0 = arith.constant 0 : i32
    %c0_i32_1 = arith.constant 0 : i32
    return %c0_i32, %c0_i32_0 : i32, i32
  }
  func.func @transform_5(%arg0: i32) -> (i32, i32) {
    %c0_i32 = arith.constant 0 : i32
    %c0_i32_0 = arith.constant 0 : i32
    %c0_i32_1 = arith.constant 0 : i32
    return %c0_i32, %c0_i32_0 : i32, i32
  }
  func.func @transform_6(%arg0: i32) -> (i32, i32) {
    %c0_i32 = arith.constant 0 : i32
    %c0_i32_0 = arith.constant 0 : i32
    %c0_i32_1 = arith.constant 0 : i32
    return %c0_i32, %c0_i32_0 : i32, i32
  }
  func.func @transform_7(%arg0: i32) -> (i32, i32) {
    %c0_i32 = arith.constant 0 : i32
    %c0_i32_0 = arith.constant 0 : i32
    %c0_i32_1 = arith.constant 0 : i32
    return %c0_i32, %c0_i32_0 : i32, i32
  }
  func.func @transform_8(%arg0: i32) -> (i32, i32) {
    %c0_i32 = arith.constant 0 : i32
    %c0_i32_0 = arith.constant 0 : i32
    %c0_i32_1 = arith.constant 0 : i32
    return %c0_i32, %c0_i32_0 : i32, i32
  }
  func.func @transform_9(%arg0: i32) -> (i32, i32) {
    %c0_i32 = arith.constant 0 : i32
    %c0_i32_0 = arith.constant 0 : i32
    %c0_i32_1 = arith.constant 0 : i32
    return %c0_i32, %c0_i32_0 : i32, i32
  }
  func.func @transform_10(%arg0: i32) -> (i32, i32) {
    %c0_i32 = arith.constant 0 : i32
    %c0_i32_0 = arith.constant 0 : i32
    %c0_i32_1 = arith.constant 0 : i32
    return %c0_i32, %c0_i32_0 : i32, i32
  }
  func.func @transform_11(%arg0: i32) -> (i32, i32) {
    %c0_i32 = arith.constant 0 : i32
    %c0_i32_0 = arith.constant 0 : i32
    %c0_i32_1 = arith.constant 0 : i32
    return %c0_i32, %c0_i32_0 : i32, i32
  }
  func.func @transform_12(%arg0: i32) -> (i32, i32) {
    %c0_i32 = arith.constant 0 : i32
    %c0_i32_0 = arith.constant 0 : i32
    return %arg0, %c0_i32 : i32, i32
  }
}

</mosaic_0001>

<bundles_post_ra>
// kernel: critic_forward.1
= control target key start
LH: loop header
LB: loop body
LE: loop exit
PB: predicated region body
PF: predicated region fallthrough
CT: control target
= control target key end

     0   :  { %17 = vsyncpa [#allocation3], 0  ;;  %s1613_s0 = inlined_call_operand.hbm [shape: f32[8,24], index: 0, kind: input, shape index: {}]   ;;  %s1614_s1 = inlined_call_operand.hbm [shape: f32[8,8], index: 1, kind: input, shape index: {}]   ;;  %s1615_s2 = inlined_call_operand.hbm [shape: bf16[24,512], index: 2, kind: input, shape index: {}]   ;;  %s1616_s3 = inlined_call_operand.hbm [shape: bf16[8,512], index: 3, kind: input, shape index: {}]   ;;  %s1617_s4 = inlined_call_operand.hbm [shape: f32[1,512], index: 4, kind: input, shape index: {}]   ;;  %s1618_s5 = inlined_call_operand.hbm [shape: bf16[256,256], index: 5, kind: input, shape index: {}]   ;;  %s1619_s6 = inlined_call_operand.vmem [shape: f32[1,256], index: 6, kind: input, shape index: {}]   ;;  %s1620_s7 = inlined_call_operand.hbm [shape: bf16[256,256], index: 7, kind: input, shape index: {}]   ;;  %s1621_s8 = inlined_call_operand.vmem [shape: f32[1,256], index: 8, kind: input, shape index: {}]   ;;  %s1622_s9 = inlined_call_operand.vmem [shape: f32[1,256], index: 9, kind: input, shape index: {}]   ;;  %s1623_s10 = inlined_call_operand.vmem [shape: f32[1,256], index: 10, kind: input, shape index: {}]   ;;  %s1624_s11 = inlined_call_operand.hbm [shape: f32[1,2], index: 11, kind: input, shape index: {}]   ;;  %s1625_s12 = inlined_call_operand.vmem [shape: f32[8,2], index: 12, kind: output, shape index: {}]  }
   0x1   :  { %18 = vsyncpa [#allocation5], 0 }
   0x2   :  { %19 = vsyncpa [#allocation8], 0 }
   0x3   :  { %20 = vsyncpa [#allocation11], 0  ;;  %s38_s23 = sshll.u32 %s1614_s1, 4  ;;  %s39_s23 = int_to_ptr.hbm [resolvable:$true] %s38_s23 }
   0x4   :  { %21 = vsyncpa [#allocation14], 0  ;;  %s1475_s24 = smov [#allocation4]   ;;  %s62_s28 = sshll.u32 %s1616_s3, 4  ;;  %s63_s28 = int_to_ptr.hbm [resolvable:$true] %s62_s28 }
   0x5   :  { %s40_s25 = sshll.u32 %s1475_s24, 4  ;;  %s1476_s29 = smov [#allocation7]   ;;  %s41_s25 = int_to_ptr.vmem [resolvable:$true] %s40_s25 }
   0x6   :  { %43 = dma.hbm_to_vmem [thread:$0]  %s39_s23, 128, %s41_s25, [#allocation5]  }
   0x7   :  { %s64_s30 = sshll.u32 %s1476_s29, 4  ;;  %s83_s15 = sshll.u32 %s1618_s5, 4  ;;  %s65_s30 = int_to_ptr.vmem [resolvable:$true] %s64_s30  ;;  %s84_s15 = int_to_ptr.hbm [resolvable:$true] %s83_s15 }
   0x8   :  { %67 = dma.hbm_to_vmem [thread:$0]  %s63_s28, 256, %s65_s30, [#allocation8]  }
   0x9   :  { %s1477_s1 = smov [#allocation10]   ;;  %s27_s19 = sshll.u32 %s1613_s0, 4  ;;  %s28_s19 = int_to_ptr.hbm [resolvable:$true] %s27_s19 }
   0xa   :  { %s85_s16 = sshll.u32 %s1477_s1, 4  ;;  %s1478_s20 = smov 128   ;;  %s86_s16 = int_to_ptr.vmem [resolvable:$true] %s85_s16 }
   0xb   :  { %s1479_s3 = smov 8   ;;  %s1480_s21 = smov [#allocation2]  }
   0xc   :  { %91 = dma.hbm_to_vmem [thread:$0]  %s84_s15, 4096, %s86_s16, [#allocation11], %s1478_s20, %s1478_s20, %s1479_s3  }
   0xd   :  { %s29_s22 = sshll.u32 %s1480_s21, 4  ;;  %s48_s24 = sshll.u32 %s1615_s2, 4  ;;  %s30_s22 = int_to_ptr.vmem [resolvable:$true] %s29_s22  ;;  %s49_s24 = int_to_ptr.hbm [resolvable:$true] %s48_s24 }
   0xe   :  { %32 = dma.hbm_to_vmem [thread:$0]  %s28_s19, 128, %s30_s22, [#allocation3]  }
   0xf   :  { %s1481_s25 = smov [#allocation6]   ;;  %s73_s28 = sshll.u32 %s1617_s4, 4  ;;  %s74_s28 = int_to_ptr.hbm [resolvable:$true] %s73_s28 }
  0x10   :  { %s50_s26 = sshll.u32 %s1481_s25, 4  ;;  %s1482_s29 = smov 256   ;;  %s51_s26 = int_to_ptr.vmem [resolvable:$true] %s50_s26 }
  0x11   :  { %s1483_s30 = smov 16   ;;  %s1484_s13 = smov [#allocation9]  }
  0x12   :  { %56 = dma.hbm_to_vmem [thread:$0]  %s49_s24, 768, %s51_s26, [#allocation5], %s1482_s29, %s1482_s29, %s1483_s30  }
  0x13   :  { %s75_s14 = sshll.u32 %s1484_s13, 4  ;;  %s98_s2 = sshll.u32 %s1620_s7, 4  ;;  %s76_s14 = int_to_ptr.vmem [resolvable:$true] %s75_s14  ;;  %s99_s2 = int_to_ptr.hbm [resolvable:$true] %s98_s2 }
  0x14   :  { %78 = dma.hbm_to_vmem [thread:$0]  %s74_s28, 64, %s76_s14, [#allocation8]  }
  0x15   :  { %s118_s18 = sshll.u32 %s1624_s11, 4  ;;  %s1485_s19 = smov [#allocation12]   ;;  %s119_s18 = int_to_ptr.hbm [resolvable:$true] %s118_s18 }
  0x16   :  { %s100_s21 = sshll.u32 %s1485_s19, 4  ;;  %s1486_s4 = smov [#allocation13]   ;;  %s101_s21 = int_to_ptr.vmem [resolvable:$true] %s100_s21 }
  0x17   :  { %106 = dma.hbm_to_vmem [thread:$0]  %s99_s2, 4096, %s101_s21, [#allocation11], %s1478_s20, %s1478_s20, %s1479_s3  }
  0x18   :  { %s120_s22 = sshll.u32 %s1486_s4, 4  ;;  %s121_s22 = int_to_ptr.vmem [resolvable:$true] %s120_s22 }
  0x19   :  { %123 = dma.hbm_to_vmem [thread:$0]  %s119_s18, 16, %s121_s22, [#allocation14]  }
  0x1a   :  { %1465 = dma.done.wait [#allocation3], 128  }
  0x1b   :  { %1466 = vsyncadd [#allocation3], 4294967168 }
  0x1c   :  { %1467 = dma.done.wait [#allocation5], 896  }
  0x1d   :  { %1468 = vsyncadd [#allocation5], 4294966400 }
  0x1e   :  { %1469 = dma.done.wait [#allocation8], 320  }
  0x1f   :  { %1470 = vsyncadd [#allocation8], 4294966976 }
  0x20   :  { %1471 = dma.done.wait [#allocation11], 8192  }
  0x21   :  { %1472 = vsyncadd [#allocation11], 4294959104 }
  0x22   :  { %1473 = dma.done.wait [#allocation14], 16  }
  0x23   :  { %1474 = vsyncadd [#allocation14], 4294967280  ;;  %v167_v0 = vld [vmem:[#allocation7] sm:$0xff]  ;;  %vm183_vm0 = vcmask 1043456   ;;  %v168_v1 = vld [vmem:[#allocation7 + $0x8] sm:$0xff]  ;;  %vm179_vm1 = vcmask 64512  }
  0x24   :  { %v159_v2 = vld [vmem:[#allocation4] sm:$0xff]  ;;  %v171_v3 = vunpack.c.l.b16 %v167_v0  ;;  %v172_v4 = vunpack.c.h.b16 %v167_v0  ;;  %v173_v5 = vunpack.c.l.b16 %v168_v1  ;;  %v174_v6 = vunpack.c.h.b16 %v168_v1  ;;  %v165_v7 = vld [vmem:[#allocation6 + $0x20] sm:$0xff]  ;;  %v166_v11 = vld [vmem:[#allocation6 + $0x28] sm:$0xff] }
  0x25   :  { %v160_v8 = vpack.c.bf16 %v159_v2, %v159_v2  ;;  %v262_v9 = vunpack.c.l.b16 %v165_v7  ;;  %v263_v10 = vunpack.c.h.b16 %v165_v7  ;;  %v918_v16 = vld [vmem:[#allocation6] sm:$0xf]  ;;  %v1194_v17 = vld [vmem:[#allocation6 + $0xc] sm:$0xf0]  ;;  %v264_v20 = vunpack.c.l.b16 %v166_v11  ;;  %v1192_v22 = vld [vmem:[#allocation6 + $0x4] sm:$0xf] }
  0x26   :  { %v175_v12 = vpack.c.b16 %v171_v3, %v171_v3  ;;  %v176_v13 = vpack.c.b16 %v172_v4, %v172_v4  ;;  %v177_v14 = vpack.c.b16 %v173_v5, %v173_v5  ;;  %v178_v15 = vpack.c.b16 %v174_v6, %v174_v6  ;;  %v920_v23 = vld [vmem:[#allocation6 + $0x10] sm:$0xf0]  ;;  %v1211_v29 = vld [vmem:[#allocation10 + $0x74] sm:$0xf0]  ;;  %v926_v34 = vld [vmem:[#allocation6 + $0x8] sm:$0xf] }
  0x27   :  { %v270_v18 = vpack.c.b16 %v262_v9, %v262_v9  ;;  %v271_v19 = vpack.c.b16 %v263_v10, %v263_v10  ;;  %v265_v21 = vunpack.c.h.b16 %v166_v11  ;;  %v994_v24 = vld [vmem:[#allocation10 + $0x70] sm:$0xf]  ;;  %v272_v32 = vpack.c.b16 %v264_v20, %v264_v20  ;;  %v1227_v36 = vld [vmem:[#allocation10 + $0xf4] sm:$0xf0]  ;;  %v1195_v37 = vld [vmem:[#allocation6 + $0x14] sm:$0xf0] }
  0x28   :  { %v185_v25 = vsel %vm183_vm0, %v175_v12, 0  ;;  %v188_v26 = vsel %vm183_vm0, %v176_v13, 0  ;;  %v191_v27 = vsel %vm183_vm0, %v177_v14, 0  ;;  %v194_v28 = vsel %vm183_vm0, %v178_v15, 0  ;;  %v1058_v35 = vld [vmem:[#allocation10 + $0xf0] sm:$0xf] }
  0x29   :  { %203 = vmatpush.bf16.msra.mxu0 %v185_v25  ;;  %216 = vmatpush.bf16.msra.mxu1 %v188_v26  ;;  %v283_v30 = vsel %vm183_vm0, %v270_v18, 0  ;;  %v286_v31 = vsel %vm183_vm0, %v271_v19, 0  ;;  %v273_v33 = vpack.c.b16 %v265_v21, %v265_v21  ;;  %v1193_v38 = vld [vmem:[#allocation6 + $0xc] sm:$0xf]  ;;  %v928_v39 = vld [vmem:[#allocation6 + $0x18] sm:$0xf0]  ;;  %v919_v40 = vor.u32 %v1194_v17, %v918_v16 }
  0x2a   :  { %229 = vmatpush.bf16.msra.mxu2 %v191_v27  ;;  %242 = vmatpush.bf16.msra.mxu3 %v194_v28  ;;  %v289_v41 = vsel %vm183_vm0, %v272_v32, 0  ;;  %v923_v43 = vor.u32 %v1192_v22, %v920_v23  ;;  %v1210_v44 = vld [vmem:[#allocation10 + $0x74] sm:$0xf]  ;;  %v996_v45 = vld [vmem:[#allocation10 + $0x78] sm:$0xf0]  ;;  %v995_v46 = vor.u32 %v1211_v29, %v994_v24  ;;  %v1059_v47 = vor.u32 %v1227_v36, %v1058_v35  ;;  %v157_v12 = vld [vmem:[#allocation2] sm:$0xff] }
  0x2b   :  { %v292_v42 = vsel %vm183_vm0, %v273_v33, 0  ;;  %v1226_v48 = vld [vmem:[#allocation10 + $0xf4] sm:$0xf]  ;;  %v1060_v49 = vld [vmem:[#allocation10 + $0xf8] sm:$0xf0]  ;;  %v927_v54 = vor.u32 %v1195_v37, %v926_v34  ;;  %v931_v55 = vor.u32 %v1193_v38, %v928_v39  ;;  %v999_v56 = vor.u32 %v1210_v44, %v996_v45 }
  0x2c   :  { %912 = vmatmul.msk.bf16.vlgmr.msra.gmra.mxu0 %vm179_vm1, %v160_v8  ;;  %913 = vmatmul.msk.bf16.vlgmr.msra.gmra.mxu1 %vm179_vm1, %v160_v8  ;;  %v986_v50 = vld [vmem:[#allocation10 + $0x60] sm:$0xf]  ;;  %v1209_v51 = vld [vmem:[#allocation10 + $0x64] sm:$0xf0]  ;;  %v1063_v57 = vor.u32 %v1226_v48, %v1060_v49  ;;  %v1208_v58 = vld [vmem:[#allocation10 + $0x64] sm:$0xf]  ;;  %v158_v20 = vpack.c.bf16 %v157_v12, %v157_v12 }
  0x2d   :  { %300 = vmatpush.bf16.msrb.mxu0 %v283_v30  ;;  %313 = vmatpush.bf16.msrb.mxu1 %v286_v31  ;;  %v1050_v52 = vld [vmem:[#allocation10 + $0xe0] sm:$0xf]  ;;  %v1225_v53 = vld [vmem:[#allocation10 + $0xe4] sm:$0xf0]  ;;  %v988_v59 = vld [vmem:[#allocation10 + $0x68] sm:$0xf0]  ;;  %v987_v60 = vor.u32 %v1209_v51, %v986_v50 }
  0x2e   :  { %914 = vmatmul.msk.bf16.vlgmr.msra.gmra.mxu2 %vm179_vm1, %v160_v8  ;;  %915 = vmatmul.msk.bf16.vlgmr.msra.gmra.mxu3 %vm179_vm1, %v160_v8  ;;  %v1051_v61 = vor.u32 %v1225_v53, %v1050_v52  ;;  %v1224_v62 = vld [vmem:[#allocation10 + $0xe4] sm:$0xf]  ;;  %v1052_v63 = vld [vmem:[#allocation10 + $0xe8] sm:$0xf0]  ;;  %v978_v0 = vld [vmem:[#allocation10 + $0x50] sm:$0xf]  ;;  %v991_v4 = vor.u32 %v1208_v58, %v988_v59 }
  0x2f   :  { %326 = vmatpush.bf16.msrb.mxu2 %v289_v41  ;;  %339 = vmatpush.bf16.msrb.mxu3 %v292_v42  ;;  %v1207_v1 = vld [vmem:[#allocation10 + $0x54] sm:$0xf0]  ;;  %v1042_v2 = vld [vmem:[#allocation10 + $0xd0] sm:$0xf]  ;;  %v1055_v5 = vor.u32 %v1224_v62, %v1052_v63  ;;  %v1206_v6 = vld [vmem:[#allocation10 + $0x54] sm:$0xf] }
  0x30   :  { %v1223_v3 = vld [vmem:[#allocation10 + $0xd4] sm:$0xf0]  ;;  %v979_v7 = vor.u32 %v1207_v1, %v978_v0  ;;  %v980_v9 = vld [vmem:[#allocation10 + $0x58] sm:$0xf0]  ;;  %v1222_v10 = vld [vmem:[#allocation10 + $0xd4] sm:$0xf] }
  0x31   :  { %301 = vmatpush.bf16.msrb.mxu0 %v919_v40  ;;  %314 = vmatpush.bf16.msrb.mxu1 %v923_v43  ;;  %v1043_v8 = vor.u32 %v1223_v3, %v1042_v2  ;;  %v1044_v11 = vld [vmem:[#allocation10 + $0xd8] sm:$0xf0]  ;;  %v970_v13 = vld [vmem:[#allocation10 + $0x40] sm:$0xf]  ;;  %v1205_v14 = vld [vmem:[#allocation10 + $0x44] sm:$0xf0]  ;;  %v983_v15 = vor.u32 %v1206_v6, %v980_v9 }
  0x32   :  { %v1047_v16 = vor.u32 %v1222_v10, %v1044_v11  ;;  %v1034_v17 = vld [vmem:[#allocation10 + $0xc0] sm:$0xf]  ;;  %v1221_v18 = vld [vmem:[#allocation10 + $0xc4] sm:$0xf0]  ;;  %v1204_v19 = vld [vmem:[#allocation10 + $0x44] sm:$0xf]  ;;  %v971_v24 = vor.u32 %v1205_v14, %v970_v13 }
  0x33   :  { %327 = vmatpush.bf16.msrb.mxu2 %v927_v54  ;;  %340 = vmatpush.bf16.msrb.mxu3 %v931_v55  ;;  %v972_v21 = vld [vmem:[#allocation10 + $0x48] sm:$0xf0]  ;;  %v1220_v22 = vld [vmem:[#allocation10 + $0xc4] sm:$0xf]  ;;  %vm278_vm2 = vcmask 195584   ;;  %v1035_v25 = vor.u32 %v1221_v18, %v1034_v17  ;;  %vm894_vm3 = vcmask 7168  }
  0x34   :  { %v1036_v23 = vld [vmem:[#allocation10 + $0xc8] sm:$0xf0]  ;;  %v962_v26 = vld [vmem:[#allocation10 + $0x30] sm:$0xf]  ;;  %v1203_v27 = vld [vmem:[#allocation10 + $0x34] sm:$0xf0]  ;;  %v975_v28 = vor.u32 %v1204_v19, %v972_v21 }
  0x35   :  { %566 = vmatpush.bf16.msra.mxu0 %v995_v46  ;;  %579 = vmatpush.bf16.msra.mxu1 %v1059_v47  ;;  %v1039_v29 = vor.u32 %v1220_v22, %v1036_v23  ;;  %v1026_v30 = vld [vmem:[#allocation10 + $0xb0] sm:$0xf]  ;;  %v1219_v31 = vld [vmem:[#allocation10 + $0xb4] sm:$0xf0]  ;;  %v1202_v32 = vld [vmem:[#allocation10 + $0x34] sm:$0xf]  ;;  %v963_v36 = vor.u32 %v1203_v27, %v962_v26 }
  0x36   :  { %v964_v33 = vld [vmem:[#allocation10 + $0x38] sm:$0xf0]  ;;  %v1218_v34 = vld [vmem:[#allocation10 + $0xb4] sm:$0xf]  ;;  %v1027_v37 = vor.u32 %v1219_v31, %v1026_v30  ;;  %v954_v40 = vld [vmem:[#allocation10 + $0x20] sm:$0xf] }
  0x37   :  { %592 = vmatpush.bf16.msra.mxu2 %v999_v56  ;;  %605 = vmatpush.bf16.msra.mxu3 %v1063_v57  ;;  %v1028_v35 = vld [vmem:[#allocation10 + $0xb8] sm:$0xf0]  ;;  %v967_v38 = vor.u32 %v1202_v32, %v964_v33  ;;  %v1201_v41 = vld [vmem:[#allocation10 + $0x24] sm:$0xf0]  ;;  %v1018_v42 = vld [vmem:[#allocation10 + $0xa0] sm:$0xf] }
  0x38   :  { %v1031_v39 = vor.u32 %v1218_v34, %v1028_v35  ;;  %v955_v43 = vor.u32 %v1201_v41, %v954_v40  ;;  %v1217_v44 = vld [vmem:[#allocation10 + $0xa4] sm:$0xf0]  ;;  %v1200_v45 = vld [vmem:[#allocation10 + $0x24] sm:$0xf]  ;;  %v956_v46 = vld [vmem:[#allocation10 + $0x28] sm:$0xf0] }
  0x39   :  { %567 = vmatpush.bf16.msra.mxu0 %v987_v60  ;;  %580 = vmatpush.bf16.msra.mxu1 %v1051_v61  ;;  %v1019_v47 = vor.u32 %v1217_v44, %v1018_v42  ;;  %v959_v48 = vor.u32 %v1200_v45, %v956_v46  ;;  %v1216_v49 = vld [vmem:[#allocation10 + $0xa4] sm:$0xf]  ;;  %v1020_v50 = vld [vmem:[#allocation10 + $0xa8] sm:$0xf0]  ;;  %v946_v51 = vld [vmem:[#allocation10 + $0x10] sm:$0xf] }
  0x3a   :  { %v1023_v52 = vor.u32 %v1216_v49, %v1020_v50  ;;  %v1199_v53 = vld [vmem:[#allocation10 + $0x14] sm:$0xf0]  ;;  %v1010_v54 = vld [vmem:[#allocation10 + $0x90] sm:$0xf]  ;;  %v1198_v58 = vld [vmem:[#allocation10 + $0x14] sm:$0xf] }
  0x3b   :  { %593 = vmatpush.bf16.msra.mxu2 %v991_v4  ;;  %606 = vmatpush.bf16.msra.mxu3 %v1055_v5  ;;  %v1215_v55 = vld [vmem:[#allocation10 + $0x94] sm:$0xf0]  ;;  %v947_v56 = vor.u32 %v1199_v53, %v946_v51  ;;  %v948_v59 = vld [vmem:[#allocation10 + $0x18] sm:$0xf0]  ;;  %v1214_v60 = vld [vmem:[#allocation10 + $0x94] sm:$0xf] }
  0x3c   :  { %932 = vmatmul.msk.bf16.vlgmr.msrb.gmra.mxu0 %vm278_vm2, %v158_v20  ;;  %933 = vmatmul.msk.bf16.vlgmr.msrb.gmra.mxu1 %vm278_vm2, %v158_v20  ;;  %v1011_v57 = vor.u32 %v1215_v55, %v1010_v54  ;;  %v951_v61 = vor.u32 %v1198_v58, %v948_v59  ;;  %v1012_v62 = vld [vmem:[#allocation10 + $0x98] sm:$0xf0]  ;;  %v938_v0 = vld [vmem:[#allocation10] sm:$0xf]  ;;  %v1197_v1 = vld [vmem:[#allocation10 + $0x4] sm:$0xf0] }
  0x3d   :  { %568 = vmatpush.bf16.msra.mxu0 %v979_v7  ;;  %581 = vmatpush.bf16.msra.mxu1 %v1043_v8  ;;  %v1015_v63 = vor.u32 %v1214_v60, %v1012_v62  ;;  %v1002_v2 = vld [vmem:[#allocation10 + $0x80] sm:$0xf]  ;;  %v939_v3 = vor.u32 %v1197_v1, %v938_v0  ;;  %v1213_v4 = vld [vmem:[#allocation10 + $0x84] sm:$0xf0]  ;;  %v1196_v5 = vld [vmem:[#allocation10 + $0x4] sm:$0xf] }
  0x3e   :  { %934 = vmatmul.msk.bf16.vlgmr.msrb.gmra.mxu2 %vm278_vm2, %v158_v20  ;;  %935 = vmatmul.msk.bf16.vlgmr.msrb.gmra.mxu3 %vm278_vm2, %v158_v20  ;;  %v940_v6 = vld [vmem:[#allocation10 + $0x8] sm:$0xf0]  ;;  %v1003_v7 = vor.u32 %v1213_v4, %v1002_v2  ;;  %v1212_v9 = vld [vmem:[#allocation10 + $0x84] sm:$0xf]  ;;  %v1122_v11 = vld [vmem:[#allocation12 + $0x70] sm:$0xf] }
  0x3f   :  { %594 = vmatpush.bf16.msra.mxu2 %v983_v15  ;;  %607 = vmatpush.bf16.msra.mxu3 %v1047_v16  ;;  %v943_v8 = vor.u32 %v1196_v5, %v940_v6  ;;  %v1004_v10 = vld [vmem:[#allocation10 + $0x88] sm:$0xf0]  ;;  %v1243_v13 = vld [vmem:[#allocation12 + $0x74] sm:$0xf0]  ;;  %v1186_v14 = vld [vmem:[#allocation12 + $0xf0] sm:$0xf] }
  0x40   :  { %v1007_v12 = vor.u32 %v1212_v9, %v1004_v10  ;;  %v1259_v15 = vld [vmem:[#allocation12 + $0xf4] sm:$0xf0]  ;;  %v1123_v16 = vor.u32 %v1243_v13, %v1122_v11  ;;  %v1242_v18 = vld [vmem:[#allocation12 + $0x74] sm:$0xf]  ;;  %v1124_v19 = vld [vmem:[#allocation12 + $0x78] sm:$0xf0] }
  0x41   :  { %569 = vmatpush.bf16.msra.mxu0 %v971_v24  ;;  %582 = vmatpush.bf16.msra.mxu1 %v1035_v25  ;;  %v1187_v17 = vor.u32 %v1259_v15, %v1186_v14  ;;  %v1258_v20 = vld [vmem:[#allocation12 + $0xf4] sm:$0xf]  ;;  %v1127_v21 = vor.u32 %v1242_v18, %v1124_v19  ;;  %v1188_v22 = vld [vmem:[#allocation12 + $0xf8] sm:$0xf0]  ;;  %v1114_v23 = vld [vmem:[#allocation12 + $0x60] sm:$0xf] }
  0x42   :  { %v1241_v24 = vld [vmem:[#allocation12 + $0x64] sm:$0xf0]  ;;  %v1191_v25 = vor.u32 %v1258_v20, %v1188_v22  ;;  %v1178_v27 = vld [vmem:[#allocation12 + $0xe0] sm:$0xf]  ;;  %v1116_v31 = vld [vmem:[#allocation12 + $0x68] sm:$0xf0] }
  0x43   :  { %595 = vmatpush.bf16.msra.mxu2 %v975_v28  ;;  %608 = vmatpush.bf16.msra.mxu3 %v1039_v29  ;;  %v1115_v26 = vor.u32 %v1241_v24, %v1114_v23  ;;  %v1257_v28 = vld [vmem:[#allocation12 + $0xe4] sm:$0xf0]  ;;  %v1240_v29 = vld [vmem:[#allocation12 + $0x64] sm:$0xf]  ;;  %v1180_v33 = vld [vmem:[#allocation12 + $0xe8] sm:$0xf0] }
  0x44   :  { %v1179_v30 = vor.u32 %v1257_v28, %v1178_v27  ;;  %v1256_v32 = vld [vmem:[#allocation12 + $0xe4] sm:$0xf]  ;;  %v1119_v34 = vor.u32 %v1240_v29, %v1116_v31  ;;  %v1255_v40 = vld [vmem:[#allocation12 + $0xd4] sm:$0xf0]  ;;  %v1238_v41 = vld [vmem:[#allocation12 + $0x54] sm:$0xf] }
  0x45   :  { %570 = vmatpush.bf16.msra.mxu0 %v963_v36  ;;  %583 = vmatpush.bf16.msra.mxu1 %v1027_v37  ;;  %v1183_v35 = vor.u32 %v1256_v32, %v1180_v33  ;;  %v1106_v36 = vld [vmem:[#allocation12 + $0x50] sm:$0xf]  ;;  %v1239_v37 = vld [vmem:[#allocation12 + $0x54] sm:$0xf0]  ;;  %v1254_v44 = vld [vmem:[#allocation12 + $0xd4] sm:$0xf] }
  0x46   :  { %v1172_v46 = vld [vmem:[#allocation12 + $0xd8] sm:$0xf0]  ;;  %v1237_v49 = vld [vmem:[#allocation12 + $0x44] sm:$0xf0]  ;;  %v1162_v50 = vld [vmem:[#allocation12 + $0xc0] sm:$0xf] }
  0x47   :  { %596 = vmatpush.bf16.msra.mxu2 %v967_v38  ;;  %609 = vmatpush.bf16.msra.mxu3 %v1031_v39  ;;  %v1170_v38 = vld [vmem:[#allocation12 + $0xd0] sm:$0xf]  ;;  %v1107_v39 = vor.u32 %v1239_v37, %v1106_v36  ;;  %v1236_v53 = vld [vmem:[#allocation12 + $0x44] sm:$0xf]  ;;  %v1100_v54 = vld [vmem:[#allocation12 + $0x48] sm:$0xf0] }
  0x48   :  { %v1171_v42 = vor.u32 %v1255_v40, %v1170_v38  ;;  %v1164_v58 = vld [vmem:[#allocation12 + $0xc8] sm:$0xf0]  ;;  %v1090_v60 = vld [vmem:[#allocation12 + $0x30] sm:$0xf]  ;;  %v1251_v0 = vld [vmem:[#allocation12 + $0xb4] sm:$0xf0] }
  0x49   :  { %571 = vmatpush.bf16.msra.mxu0 %v955_v43  ;;  %584 = vmatpush.bf16.msra.mxu1 %v1019_v47  ;;  %v1108_v43 = vld [vmem:[#allocation12 + $0x58] sm:$0xf0]  ;;  %v1175_v47 = vor.u32 %v1254_v44, %v1172_v46  ;;  %v1234_v1 = vld [vmem:[#allocation12 + $0x34] sm:$0xf]  ;;  %v1233_v9 = vld [vmem:[#allocation12 + $0x24] sm:$0xf0] }
  0x4a   :  { %v1111_v45 = vor.u32 %v1238_v41, %v1108_v43  ;;  %v1250_v4 = vld [vmem:[#allocation12 + $0xb4] sm:$0xf]  ;;  %v1156_v5 = vld [vmem:[#allocation12 + $0xb8] sm:$0xf0]  ;;  %v1146_v10 = vld [vmem:[#allocation12 + $0xa0] sm:$0xf] }
  0x4b   :  { %597 = vmatpush.bf16.msra.mxu2 %v959_v48  ;;  %610 = vmatpush.bf16.msra.mxu3 %v1023_v52  ;;  %v1098_v48 = vld [vmem:[#allocation12 + $0x40] sm:$0xf]  ;;  %v1253_v52 = vld [vmem:[#allocation12 + $0xc4] sm:$0xf0]  ;;  %v1232_v13 = vld [vmem:[#allocation12 + $0x24] sm:$0xf] }
  0x4c   :  { %v1099_v51 = vor.u32 %v1237_v49, %v1098_v48  ;;  %v1163_v55 = vor.u32 %v1253_v52, %v1162_v50  ;;  %v1084_v14 = vld [vmem:[#allocation12 + $0x28] sm:$0xf0]  ;;  %v1074_v20 = vld [vmem:[#allocation12 + $0x10] sm:$0xf]  ;;  %v1076_v27 = vld [vmem:[#allocation12 + $0x18] sm:$0xf0] }
  0x4d   :  { %572 = vmatpush.bf16.msra.mxu0 %v947_v56  ;;  %585 = vmatpush.bf16.msra.mxu1 %v1011_v57  ;;  %v1103_v56 = vor.u32 %v1236_v53, %v1100_v54  ;;  %v1252_v57 = vld [vmem:[#allocation12 + $0xc4] sm:$0xf]  ;;  %v1148_v18 = vld [vmem:[#allocation12 + $0xa8] sm:$0xf0]  ;;  %v1138_v22 = vld [vmem:[#allocation12 + $0x90] sm:$0xf] }
  0x4e   :  { %v1167_v59 = vor.u32 %v1252_v57, %v1164_v58  ;;  %v1140_v31 = vld [vmem:[#allocation12 + $0x98] sm:$0xf0]  ;;  %v1066_v32 = vld [vmem:[#allocation12] sm:$0xf]  ;;  %v1245_v36 = vld [vmem:[#allocation12 + $0x84] sm:$0xf0] }
  0x4f   :  { %598 = vmatpush.bf16.msra.mxu2 %v951_v61  ;;  %611 = vmatpush.bf16.msra.mxu3 %v1015_v63  ;;  %v1235_v61 = vld [vmem:[#allocation12 + $0x34] sm:$0xf0]  ;;  %v1154_v63 = vld [vmem:[#allocation12 + $0xb0] sm:$0xf]  ;;  %v1228_v38 = vld [vmem:[#allocation12 + $0x4] sm:$0xf] }
  0x50   :  { %v1091_v62 = vor.u32 %v1235_v61, %v1090_v60  ;;  %v1155_v2 = vor.u32 %v1251_v0, %v1154_v63  ;;  %v1244_v40 = vld [vmem:[#allocation12 + $0x84] sm:$0xf]  ;;  %v1132_v41 = vld [vmem:[#allocation12 + $0x88] sm:$0xf0]  ;;  %v346_v50 = vld [vmem:[#allocation9] sm:$0xf] }
  0x51   :  { %573 = vmatpush.bf16.msra.mxu0 %v939_v3  ;;  %586 = vmatpush.bf16.msra.mxu1 %v1003_v7  ;;  %v1092_v3 = vld [vmem:[#allocation12 + $0x38] sm:$0xf0]  ;;  %v1159_v7 = vor.u32 %v1250_v4, %v1156_v5  ;;  %v348_v53 = vperm.slane %v346_v50, 0  ;;  %v349_v54 = vperm.slane %v346_v50, 1  ;;  %vm901_vm4 = vcmask 15360  }
  0x52   :  { %v1095_v6 = vor.u32 %v1234_v1, %v1092_v3 }
  0x53   :  { %599 = vmatpush.bf16.msra.mxu2 %v943_v8  ;;  %612 = vmatpush.bf16.msra.mxu3 %v1007_v12  ;;  %v1082_v8 = vld [vmem:[#allocation12 + $0x20] sm:$0xf]  ;;  %v1249_v12 = vld [vmem:[#allocation12 + $0xa4] sm:$0xf0] }
  0x54   :  { %v1083_v11 = vor.u32 %v1233_v9, %v1082_v8  ;;  %v1147_v15 = vor.u32 %v1249_v12, %v1146_v10  ;;  %v351_v8 = vperm.slane %v346_v50, 3 }
  0x55   :  { %818 = vmatpush.bf16.msrb.mxu0 %v1123_v16  ;;  %831 = vmatpush.bf16.msrb.mxu1 %v1187_v17  ;;  %v1087_v16 = vor.u32 %v1232_v13, %v1084_v14  ;;  %v1248_v17 = vld [vmem:[#allocation12 + $0xa4] sm:$0xf] }
  0x56   :  { %v1151_v19 = vor.u32 %v1248_v17, %v1148_v18  ;;  %v400_v17 = vld [vmem:[%s1619_s6] sm:$0x3] }
  0x57   :  { %844 = vmatpush.bf16.msrb.mxu2 %v1127_v21  ;;  %857 = vmatpush.bf16.msrb.mxu3 %v1191_v25  ;;  %v1231_v21 = vld [vmem:[#allocation12 + $0x14] sm:$0xf0]  ;;  %v402_v18 = vperm.slane %v400_v17, 0 }
  0x58   :  { %v1247_v25 = vld [vmem:[#allocation12 + $0x94] sm:$0xf0]  ;;  %v1075_v28 = vor.u32 %v1231_v21, %v1074_v20 }
  0x59   :  { %819 = vmatpush.bf16.msrb.mxu0 %v1115_v26  ;;  %832 = vmatpush.bf16.msrb.mxu1 %v1179_v30  ;;  %v1230_v26 = vld [vmem:[#allocation12 + $0x14] sm:$0xf]  ;;  %v1139_v29 = vor.u32 %v1247_v25, %v1138_v22  ;;  %v403_v22 = vperm.slane %v400_v17, 1 }
  0x5a   :  { %v1246_v30 = vld [vmem:[#allocation12 + $0x94] sm:$0xf]  ;;  %v1079_v33 = vor.u32 %v1230_v26, %v1076_v27  ;;  %v872_v26 = vld [vmem:[%s1622_s9] sm:$0x3] }
  0x5b   :  { %845 = vmatpush.bf16.msrb.mxu2 %v1119_v34  ;;  %858 = vmatpush.bf16.msrb.mxu3 %v1183_v35  ;;  %v1229_v34 = vld [vmem:[#allocation12 + $0x4] sm:$0xf0]  ;;  %v1130_v35 = vld [vmem:[#allocation12 + $0x80] sm:$0xf]  ;;  %v1143_v37 = vor.u32 %v1246_v30, %v1140_v31 }
  0x5c   :  { %v1131_v43 = vor.u32 %v1245_v36, %v1130_v35 }
  0x5d   :  { %820 = vmatpush.bf16.msrb.mxu0 %v1107_v39  ;;  %833 = vmatpush.bf16.msrb.mxu1 %v1171_v42  ;;  %v1068_v39 = vld [vmem:[#allocation12 + $0x8] sm:$0xf0]  ;;  %v1067_v42 = vor.u32 %v1229_v34, %v1066_v32  ;;  %v874_v32 = vperm.slane %v872_v26, 0 }
  0x5e   :  { %v1071_v44 = vor.u32 %v1228_v38, %v1068_v39  ;;  %v652_v34 = vld [vmem:[%s1621_s8] sm:$0x3] }
  0x5f   :  { %846 = vmatpush.bf16.msrb.mxu2 %v1111_v45  ;;  %859 = vmatpush.bf16.msrb.mxu3 %v1175_v47  ;;  %v1135_v47 = vor.u32 %v1244_v40, %v1132_v41  ;;  %v654_v36 = vperm.slane %v652_v34, 0 }
  0x61   :  { %821 = vmatpush.bf16.msrb.mxu0 %v1099_v51  ;;  %834 = vmatpush.bf16.msrb.mxu1 %v1163_v55 }
  0x63   :  { %847 = vmatpush.bf16.msrb.mxu2 %v1103_v56  ;;  %860 = vmatpush.bf16.msrb.mxu3 %v1167_v59 }
  0x65   :  { %822 = vmatpush.bf16.msrb.mxu0 %v1091_v62  ;;  %835 = vmatpush.bf16.msrb.mxu1 %v1155_v2 }
  0x67   :  { %848 = vmatpush.bf16.msrb.mxu2 %v1095_v6  ;;  %861 = vmatpush.bf16.msrb.mxu3 %v1159_v7  ;;  %v350_v6 = vperm.slane %v346_v50, 2 }
  0x69   :  { %823 = vmatpush.bf16.msrb.mxu0 %v1083_v11  ;;  %836 = vmatpush.bf16.msrb.mxu1 %v1147_v15 }
  0x6b   :  { %849 = vmatpush.bf16.msrb.mxu2 %v1087_v16  ;;  %862 = vmatpush.bf16.msrb.mxu3 %v1151_v19 }
  0x6d   :  { %824 = vmatpush.bf16.msrb.mxu0 %v1075_v28  ;;  %837 = vmatpush.bf16.msrb.mxu1 %v1139_v29 }
  0x6f   :  { %850 = vmatpush.bf16.msrb.mxu2 %v1079_v33  ;;  %863 = vmatpush.bf16.msrb.mxu3 %v1143_v37  ;;  %v875_v33 = vperm.slane %v872_v26, 1 }
  0x71   :  { %825 = vmatpush.bf16.msrb.mxu0 %v1067_v42  ;;  %838 = vmatpush.bf16.msrb.mxu1 %v1131_v43 }
  0x73   :  { %851 = vmatpush.bf16.msrb.mxu2 %v1071_v44  ;;  %864 = vmatpush.bf16.msrb.mxu3 %v1135_v47  ;;  %v883_v47 = vld [vmem:[%s1623_s10] sm:$0x3] }
  0xa9   :  { %v205_v23 = vpop.f32.mrf.mxu0  ;;  %v218_v24 = vpop.f32.mrf.mxu1 }
  0xb1   :  { %v231_v45 = vpop.f32.mrf.mxu2  ;;  %v244_v46 = vpop.f32.mrf.mxu3 }
  0xb2   :  { %v207_v48 = vpop.f32.mrf.mxu0  ;;  %v220_v49 = vpop.f32.mrf.mxu1 }
  0xb9   :  { %v233_v51 = vpop.f32.mrf.mxu2  ;;  %v246_v52 = vpop.f32.mrf.mxu3 }
  0xba   :  { %v303_v55 = vpop.f32.mrf.mxu0  ;;  %v316_v56 = vpop.f32.mrf.mxu1 }
  0xbb   :  { %v304_v57 = vadd.f32 %v303_v55, %v205_v23  ;;  %v317_v58 = vadd.f32 %v316_v56, %v218_v24  ;;  %v886_v56 = vperm.slane %v883_v47, 1 }
  0xbd   :  { %v356_v59 = vadd.f32 %v348_v53, %v304_v57  ;;  %v357_v60 = vadd.f32 %v349_v54, %v317_v58  ;;  %v885_v54 = vperm.slane %v883_v47, 0 }
  0xbf   :  { %v360_v61 = vmax.f32 %v356_v59, 0.0  ;;  %v361_v62 = vmax.f32 %v357_v60, 0.0 }
  0xc1   :  { %v364_v63 = vpack.c.bf16 %v360_v61, %v360_v61  ;;  %v365_v0 = vpack.c.bf16 %v361_v62, %v361_v62  ;;  %v329_v1 = vpop.f32.mrf.mxu2  ;;  %v342_v2 = vpop.f32.mrf.mxu3 }
  0xc2   :  { %v305_v3 = vpop.f32.mrf.mxu0  ;;  %v318_v4 = vpop.f32.mrf.mxu1  ;;  %v330_v5 = vadd.f32 %v329_v1, %v231_v45  ;;  %v343_v7 = vadd.f32 %v342_v2, %v244_v46  ;;  %v655_v45 = vperm.slane %v652_v34, 1 }
  0xc3   :  { %574 = vmatmul.bf16.vlgmr.msra.gmra.mxu0 %v364_v63  ;;  %587 = vmatmul.bf16.vlgmr.msra.gmra.mxu1 %v365_v0 }
  0xc4   :  { %600 = vmatmul.bf16.vlgmr.msra.gmra.mxu2 %v364_v63  ;;  %613 = vmatmul.bf16.vlgmr.msra.gmra.mxu3 %v365_v0  ;;  %v358_v9 = vadd.f32 %v350_v6, %v330_v5  ;;  %v359_v10 = vadd.f32 %v351_v8, %v343_v7  ;;  %v1272_v0 = vld [vmem:[#allocation13] ss:$0 sm:$0xff] }
  0xc6   :  { %v362_v13 = vmax.f32 %v358_v9, 0.0  ;;  %v363_v14 = vmax.f32 %v359_v10, 0.0 }
  0xc8   :  { %v366_v15 = vpack.c.bf16 %v362_v13, %v362_v13  ;;  %v367_v16 = vpack.c.bf16 %v363_v14, %v363_v14 }
  0xc9   :  { %v331_v11 = vpop.f32.mrf.mxu2  ;;  %v344_v12 = vpop.f32.mrf.mxu3 }
  0xd3   :  { %826 = vmatmul.bf16.vlgmr.msrb.gmra.mxu0 %v366_v15  ;;  %839 = vmatmul.bf16.vlgmr.msrb.gmra.mxu1 %v367_v16 }
  0xd4   :  { %852 = vmatmul.bf16.vlgmr.msrb.gmra.mxu2 %v366_v15  ;;  %865 = vmatmul.bf16.vlgmr.msrb.gmra.mxu3 %v367_v16 }
 0x140   :  { %v575_v19 = vpop.f32.mrf.mxu0  ;;  %v588_v20 = vpop.f32.mrf.mxu1 }
 0x141   :  { %v576_v21 = vadd.f32 %v575_v19, %v402_v18 }
 0x143   :  { %v589_v23 = vadd.f32 %v588_v20, %v576_v21 }
 0x145   :  { %v618_v30 = vmax.f32 %v589_v23, 0.0 }
 0x147   :  { %v601_v24 = vpop.f32.mrf.mxu2  ;;  %v614_v25 = vpop.f32.mrf.mxu3  ;;  %v878_v37 = vmul.f32 %v874_v32, %v618_v30 }
 0x148   :  { %v602_v27 = vadd.f32 %v601_v24, %v403_v22  ;;  %v577_v28 = vpop.f32.mrf.mxu0  ;;  %v590_v29 = vpop.f32.mrf.mxu1 }
 0x14a   :  { %v615_v31 = vadd.f32 %v614_v25, %v602_v27 }
 0x14c   :  { %v619_v35 = vmax.f32 %v615_v31, 0.0 }
 0x14e   :  { %v879_v38 = vmul.f32 %v875_v33, %v619_v35 }
 0x14f   :  { %v603_v39 = vpop.f32.mrf.mxu2  ;;  %v616_v40 = vpop.f32.mrf.mxu3 }
 0x150   :  { %v827_v41 = vpop.f32.mrf.mxu0  ;;  %v840_v42 = vpop.f32.mrf.mxu1  ;;  %v880_v43 = vadd.f32 %v879_v38, %v878_v37 }
 0x151   :  { %v828_v44 = vadd.f32 %v827_v41, %v654_v36 }
 0x152   :  { %881 = vadd.xlane.f32.xlu0 %v880_v43 }
 0x153   :  { %v841_v46 = vadd.f32 %v840_v42, %v828_v44 }
 0x155   :  { %v870_v53 = vmax.f32 %v841_v46, 0.0 }
 0x157   :  { %v853_v48 = vpop.f32.mrf.mxu2  ;;  %v866_v49 = vpop.f32.mrf.mxu3  ;;  %v889_v58 = vmul.f32 %v885_v54, %v870_v53 }
 0x158   :  { %v854_v50 = vadd.f32 %v853_v48, %v655_v45  ;;  %v829_v51 = vpop.f32.mrf.mxu0  ;;  %v842_v52 = vpop.f32.mrf.mxu1 }
 0x15a   :  { %v867_v55 = vadd.f32 %v866_v49, %v854_v50 }
 0x15c   :  { %v871_v57 = vmax.f32 %v867_v55, 0.0 }
 0x15e   :  { %v890_v59 = vmul.f32 %v886_v56, %v871_v57 }
 0x15f   :  { %v855_v60 = vpop.f32.mrf.mxu2  ;;  %v868_v61 = vpop.f32.mrf.mxu3 }
 0x160   :  { %v891_v62 = vadd.f32 %v890_v59, %v889_v58 }
 0x162   :  { %892 = vadd.xlane.f32.xlu0 %v891_v62 }
 0x1c5   :  { %v882_v63 = vpop.xlane.xlu0 %881 }
 0x1d5   :  { %v893_v1 = vpop.xlane.xlu0 %892 }
 0x1d6   :  { %v895_v2 = vsel %vm894_vm3, %v882_v63, %v893_v1 }
 0x1d7   :  { %v900_v3 = vadd.f32 %v1272_v0, %v895_v2 }
 0x1d9   :  { %902 = vst.msk [vmem:[%s1625_s12] sm:$0xff] %vm901_vm4, %v900_v3 }
 0x1da   :  { %907 = vsyncpa [#allocation3], 1 }
 0x1db   :  { %908 = vsyncpa [#allocation5], 1 }
 0x1dc   :  { %909 = vsyncpa [#allocation8], 1 }
 0x1dd   :  { %910 = vsyncpa [#allocation11], 1 }
 0x1de   :  { %911 = vsyncpa [#allocation14], 1 }

</bundles_post_ra>
